<compile_context>
chip_gen: v5e
topology: v5e:2x2
jax: 0.10.0
libtpu: 0.0.40
codegen_flags: <defaults>
</compile_context>

<pallas_src>
import math
from functools import partial

import jax
import jax.numpy as jnp
from jax.experimental import pallas as pl
from jax.experimental.pallas import tpu as pltpu


def _round_up(x, m):
    return ((x + m - 1) // m) * m


def _vmem_budget_bytes():
    """Generation-aware VMEM budget (headroom below physical capacity)."""
    cap = None
    try:
        cap = getattr(pltpu.get_tpu_info(), "vmem_capacity_bytes", None)
    except Exception:
        cap = None
    if not cap:
        cap = 64 * 1024 * 1024          # conservative default (v7x per-TC size)
    # ~72% of physical: ~92 MiB on v5e/v6e (128 MiB), ~46 MiB on v7x (64 MiB).
    return min(int(cap * 0.72), 112 * 1024 * 1024)


def _pointer_generator_kernel(
    # inputs
    logits_ref,      # (Tt, D)    compute dtype
    enc_text_ref,    # (S, D)     compute dtype
    enc_tgt_ref,     # (Tt, D)    compute dtype
    ids_ref,         # (1, S)     int32 token ids
    mask_ref,        # (1, S)     f32 {0,1} query mask
    vocab_gen_ref,   # (Vt, D) streamed  OR  (Vpad, D) resident, compute dtype
    wq_ref,          # (D, D)
    bq_ref,          # (1, D)     f32
    wk_ref,          # (D, D)
    bk_ref,          # (1, D)     f32
    wp_l_ref,        # (D, 1)
    wp_t_ref,        # (D, 1)
    wp_e_ref,        # (D, 1)
    bp_ref,          # (1, 1)     f32
    # output
    out_ref,         # (Tt, Vt)   log-probs (out dtype)
    # scratch (persists across the doubled-V sweep of one (b, T-tile))
    a_cache,         # (n_v, Tt, Vt)  cached vocab-attn logits (LSE sweep -> emit)
    attn_s,          # (Tt, S)    compute dtype: (1 - g) * pointer_attn
    logg_s,          # (Tt, 1)    f32 log(switch)
    m_s,             # (Tt, 1)    f32 running max
    l_s,             # (Tt, 1)    f32 running sum-exp
    lse_s,           # (Tt, 1)    f32 final logsumexp
    *,
    n_v_tiles,
    v_tile,
    v_actual,        # real (unpadded) vocab size, or None if no padding
    inv_sqrt_d,
    resident_vocab,
):
    vs = pl.program_id(2)            # doubled V axis: [0, 2 * n_v_tiles)
    logits = logits_ref[...]
    cdt = logits.dtype

    # ---- once per (b, T-tile): pointer attention, text_vec, switch ----
    @pl.when(vs == 0)
    def _setup():
        enc_text = enc_text_ref[...]
        q = jnp.dot(logits, wq_ref[...],
                    preferred_element_type=jnp.float32) + bq_ref[...]
        k = jnp.dot(enc_text, wk_ref[...],
                    preferred_element_type=jnp.float32) + bk_ref[...]
        scores = jax.lax.dot_general(
            q.astype(cdt), k.astype(cdt),
            dimension_numbers=(((1,), (1,)), ((), ())),
            preferred_element_type=jnp.float32) * inv_sqrt_d     # (Tt, S)
        # masked_fill(mask == 0, -1e9) — exact PyTorch semantics (replace, not add)
        scores = jnp.where(mask_ref[...] == 0.0, -1e9, scores)
        sm = jnp.max(scores, axis=-1, keepdims=True)
        se = jnp.exp(scores - sm)
        attn = se * pl.reciprocal(jnp.sum(se, axis=-1, keepdims=True),
                                  approx=True)                   # (Tt, S) f32

        text_vec = jnp.dot(attn.astype(cdt), enc_text,
                           preferred_element_type=jnp.float32)   # (Tt, D)
        switch_pre = (
            jnp.dot(logits, wp_l_ref[...], preferred_element_type=jnp.float32)
            + jnp.dot(text_vec.astype(cdt), wp_t_ref[...],
                      preferred_element_type=jnp.float32)
            + jnp.dot(enc_tgt_ref[...], wp_e_ref[...],
                      preferred_element_type=jnp.float32)
            + bp_ref[...]
        )                                                        # (Tt, 1)
        g = 1.0 / (1.0 + jnp.exp(-switch_pre))
        # Fold the vocab/pointer switch into the operands once per (b, T-tile).
        attn_s[...] = ((1.0 - g) * attn).astype(attn_s.dtype)
        logg_s[...] = jnp.log(jnp.maximum(g, 1e-38))

        m_s[...] = jnp.full(m_s.shape, -jnp.inf, dtype=m_s.dtype)
        l_s[...] = jnp.zeros(l_s.shape, dtype=l_s.dtype)

    # ---- sweep 0 (vs < n_v): compute + cache vocab-attn tile, online LSE ----
    @pl.when(vs < n_v_tiles)
    def _lse_accum():
        if resident_vocab:
            vstart = pl.multiple_of(vs * v_tile, v_tile)
            w = vocab_gen_ref[pl.ds(vstart, v_tile), :]          # slice resident weight
        else:
            w = vocab_gen_ref[...]                               # streamed (Vt, D) tile
        a = jax.lax.dot_general(
            logits, w,
            dimension_numbers=(((1,), (1,)), ((), ())),
            preferred_element_type=jnp.float32)                  # (Tt, Vt) f32
        if v_actual is not None:
            # mask padded vocab columns out of the softmax
            col = vs * v_tile + jax.lax.broadcasted_iota(jnp.int32, a.shape, 1)
            a = jnp.where(col < v_actual, a, -1e30)
        a_cache[vs] = a.astype(a_cache.dtype)                    # cache for the emit sweep

        t_max = jnp.max(a, axis=-1, keepdims=True)
        m_new = jnp.maximum(m_s[...], t_max)
        l_s[...] = l_s[...] * jnp.exp(m_s[...] - m_new) + jnp.sum(
            jnp.exp(a - m_new), axis=-1, keepdims=True)
        m_s[...] = m_new

        @pl.when(vs == n_v_tiles - 1)
        def _finalize():
            lse_s[...] = m_s[...] + jnp.log(l_s[...])

    # ---- sweep 1 (vs >= n_v): emit log((1-g) p_text + g p_vocab + eps) ----
    @pl.when(vs >= n_v_tiles)
    def _emit():
        v_idx = vs - n_v_tiles
        a = a_cache[v_idx].astype(jnp.float32)                   # cached, no recompute
        p_vocab_g = jnp.exp(a - lse_s[...] + logg_s[...])        # g * softmax(vocab_attn)

        ids = ids_ref[...]                                       # (1, S) int32
        s_len = ids.shape[-1]
        iota_v = jax.lax.broadcasted_iota(jnp.int32, (v_tile, s_len), 0)
        one_hot_t = (iota_v == (ids - v_idx * v_tile)).astype(cdt)   # (Vt, S)
        # scatter_add over vocab dim == attn @ one_hot (switch already folded in)
        p_text_1mg = jax.lax.dot_general(
            attn_s[...], one_hot_t,
            dimension_numbers=(((1,), (1,)), ((), ())),
            preferred_element_type=jnp.float32)                  # (Tt, Vt)

        out_ref[...] = jnp.log(p_text_1mg + p_vocab_g + 1e-30).astype(out_ref.dtype)


def pointer_generator(logits, query_ids, encoded_query, query_mask, encoded_tgt,
                      params, *, compute_dtype=jnp.bfloat16, out_dtype=jnp.float32,
                      cache_dtype=jnp.float32, t_tile=None, v_tile=None,
                      resident_vocab=None, vocab_buffer_count=2):
    """Pallas PointerGenerator forward. Returns (B, T, V) log-probs in `out_dtype`."""
    B, T, D = logits.shape
    S = encoded_query.shape[1]
    V = params["vocab_gen"].shape[0]

    cd = compute_dtype
    cd_size = jnp.dtype(cd).itemsize
    out_size = jnp.dtype(out_dtype).itemsize
    cache_size = jnp.dtype(cache_dtype).itemsize
    vmem_budget = _vmem_budget_bytes()

    # ---- tile selection: lane-dense output tiles, VMEM/megacore aware ----
    if v_tile is None:
        v_tile = min(2048, _round_up(V, 128))
    V_pad = _round_up(V, v_tile)
    n_v = V_pad // v_tile

    # resident vocab_gen only when it comfortably fits (v5e/v6e 128 MiB VMEM)
    if resident_vocab is None:
        resident_vocab = (2 * V_pad * D * cd_size) <= vmem_budget // 3

    t_unit = 16 if cd_size < 4 else 8
    if t_tile is None:
        t_tile = min(512, _round_up(T, t_unit))

        def _usage(tt):
            a_cache = tt * V_pad * cache_size
            out_buf = 2 * tt * v_tile * out_size
            t_blocks = 2 * 2 * tt * D * cd_size            # logits + encoded_tgt (dbl buf)
            text_blk = 2 * S * D * cd_size
            attn = tt * S * cd_size
            if resident_vocab:
                wvoc = 2 * V_pad * D * cd_size
            else:
                wvoc = max(2, vocab_buffer_count) * v_tile * D * cd_size
            weights = 2 * (2 * D * D + 3 * D + 2 * D) * cd_size
            return a_cache + out_buf + t_blocks + text_blk + attn + wvoc + weights

        while t_tile > t_unit and _usage(t_tile) > vmem_budget:
            t_tile = max(t_unit, (t_tile // 2 // t_unit) * t_unit)
        # v7x megacore: keep at least two parallel (b, t) grid units when possible
        if B * ((_round_up(T, t_unit) + t_tile - 1) // t_tile) < 2 and t_tile > t_unit:
            t_tile = max(t_unit, (t_tile // 2 // t_unit) * t_unit)

    T_pad = _round_up(T, t_tile)
    n_t = T_pad // t_tile

    # ---- prepare / pad operands ----
    def _pad_t(x):
        return jnp.pad(x, ((0, 0), (0, T_pad - T), (0, 0))) if T_pad != T else x

    logits_c = _pad_t(logits).astype(cd)
    enc_t_c = _pad_t(encoded_tgt).astype(cd)
    enc_q_c = encoded_query.astype(cd)

    vocab_gen = params["vocab_gen"]
    if V_pad != V:
        vocab_gen = jnp.pad(vocab_gen, ((0, V_pad - V), (0, 0)))
    vocab_gen = vocab_gen.astype(cd)

    ids_3d = query_ids.astype(jnp.int32).reshape(B, 1, S)
    mask_3d = query_mask.astype(jnp.float32).reshape(B, 1, S)

    wq = params["Wq"].astype(cd)
    wk = params["Wk"].astype(cd)
    wp_l = params["wp_l"].reshape(D, 1).astype(cd)
    wp_t = params["wp_t"].reshape(D, 1).astype(cd)
    wp_e = params["wp_e"].reshape(D, 1).astype(cd)
    bq = params["bq"].astype(jnp.float32)
    bk = params["bk"].astype(jnp.float32)
    bp = params["bp"].astype(jnp.float32)

    # ---- specs ----
    sq = pl.Squeezed()
    if resident_vocab:
        vocab_spec = pl.BlockSpec((V_pad, D), lambda b, t, v: (0, 0))
    else:
        # min(v, n_v-1): the emit sweep keeps the last tile pinned -> no re-DMA
        vg_map = lambda b, t, v: (jnp.minimum(v, n_v - 1), 0)
        if vocab_buffer_count > 2:
            vocab_spec = pl.BlockSpec((v_tile, D), vg_map,
                                      pipeline_mode=pl.Buffered(vocab_buffer_count))
        else:
            vocab_spec = pl.BlockSpec((v_tile, D), vg_map)

    in_specs = [
        pl.BlockSpec((sq, t_tile, D), lambda b, t, v: (b, t, 0)),     # logits
        pl.BlockSpec((sq, S, D),      lambda b, t, v: (b, 0, 0)),     # encoded_query
        pl.BlockSpec((sq, t_tile, D), lambda b, t, v: (b, t, 0)),     # encoded_tgt
        pl.BlockSpec((sq, 1, S),      lambda b, t, v: (b, 0, 0)),     # query ids
        pl.BlockSpec((sq, 1, S),      lambda b, t, v: (b, 0, 0)),     # query mask
        vocab_spec,                                                   # vocab_gen
        pl.BlockSpec((D, D),          lambda b, t, v: (0, 0)),        # Wq
        pl.BlockSpec((1, D),          lambda b, t, v: (0, 0)),        # bq
        pl.BlockSpec((D, D),          lambda b, t, v: (0, 0)),        # Wk
        pl.BlockSpec((1, D),          lambda b, t, v: (0, 0)),        # bk
        pl.BlockSpec((D, 1),          lambda b, t, v: (0, 0)),        # wp_logits
        pl.BlockSpec((D, 1),          lambda b, t, v: (0, 0)),        # wp_text
        pl.BlockSpec((D, 1),          lambda b, t, v: (0, 0)),        # wp_enc
        pl.BlockSpec((1, 1),          lambda b, t, v: (0, 0)),        # bp
    ]
    # Output stays pinned on block (b, t, 0) during the LSE sweep; it is only
    # written (then flushed on block-index change) during the emit sweep.
    out_specs = pl.BlockSpec(
        (sq, t_tile, v_tile),
        lambda b, t, v: (b, t, jnp.maximum(v - n_v, 0)))

    grid_spec = pltpu.PrefetchScalarGridSpec(
        num_scalar_prefetch=0,
        grid=(B, n_t, 2 * n_v),
        in_specs=in_specs,
        out_specs=out_specs,
        scratch_shapes=[
            pltpu.VMEM((n_v, t_tile, v_tile), cache_dtype),  # vocab-attn cache
            pltpu.VMEM((t_tile, S), cd),                     # (1-g) * attn
            pltpu.VMEM((t_tile, 1), jnp.float32),            # log(g)
            pltpu.VMEM((t_tile, 1), jnp.float32),            # running max
            pltpu.VMEM((t_tile, 1), jnp.float32),            # running sum-exp
            pltpu.VMEM((t_tile, 1), jnp.float32),            # lse
        ],
    )

    kernel = partial(
        _pointer_generator_kernel,
        n_v_tiles=n_v, v_tile=v_tile,
        v_actual=(V if V_pad != V else None),
        inv_sqrt_d=1.0 / math.sqrt(D),
        resident_vocab=resident_vocab)

    out_pad = pl.pallas_call(
        kernel,
        out_shape=jax.ShapeDtypeStruct((B, T_pad, V_pad), out_dtype),
        grid_spec=grid_spec,
        compiler_params=pltpu.CompilerParams(
            dimension_semantics=("parallel", "parallel", "arbitrary"),
            vmem_limit_bytes=vmem_budget,
        ),
    )(
        logits_c, enc_q_c, enc_t_c, ids_3d, mask_3d,
        vocab_gen, wq, bq, wk, bk, wp_l, wp_t, wp_e, bp,
    )
    return out_pad[:, :T, :V]


def pointer_generator_reference(logits, query_ids, encoded_query, query_mask,
                                encoded_tgt, params):
    """Pure-JAX reference mirroring the PyTorch forward."""
    D = logits.shape[-1]
    V = params["vocab_gen"].shape[0]
    p_vocab = jax.nn.softmax(logits @ params["vocab_gen"].T, axis=-1)
    q = logits @ params["Wq"] + params["bq"]
    k = encoded_query @ params["Wk"] + params["bk"]
    scores = jnp.einsum("btd,bsd->bts", q, k) / math.sqrt(D)
    scores = jnp.where(query_mask.astype(jnp.float32) == 0.0, -1e9, scores)
    attn = jax.nn.softmax(scores, axis=-1)
    one_hot = jax.nn.one_hot(query_ids, V, dtype=jnp.float32)          # (B,S,V)
    p_text_ptr = jnp.einsum("bts,bsv->btv", attn, one_hot)             # scatter_add
    text_vec = jnp.einsum("bts,bsd->btd", attn, encoded_query)
    switch_pre = (logits @ params["wp_l"][0] + text_vec @ params["wp_t"][0]
                  + encoded_tgt @ params["wp_e"][0] + params["bp"][0, 0])
    switch = jax.nn.sigmoid(switch_pre)[..., None]
    p_out = (1.0 - switch) * p_text_ptr + switch * p_vocab
    return jnp.log(p_out + 1e-30)


if __name__ == "__main__":
    def make_inputs(key, B, T, S, D, V):
        keys = jax.random.split(key, 12)
        logits = jax.random.normal(keys[0], (B, T, D), dtype=jnp.float32)
        encoded_query = jax.random.normal(keys[1], (B, S, D), dtype=jnp.float32)
        encoded_tgt = jax.random.normal(keys[2], (B, T, D), dtype=jnp.float32)
        query_ids = jax.random.randint(keys[3], (B, S), 0, V, dtype=jnp.int32)
        query_mask = jnp.ones((B, 1, S), dtype=jnp.float32)
        query_mask = query_mask.at[1, 0, S - 2:].set(0.0)   # mask last 2 src tokens of b=1
        params = {
            "vocab_gen": jax.random.normal(keys[4], (V, D), dtype=jnp.float32) * 0.1,
            "Wq": jax.random.normal(keys[5], (D, D), dtype=jnp.float32) * 0.1,
            "bq": jax.random.normal(keys[6], (1, D), dtype=jnp.float32) * 0.1,
            "Wk": jax.random.normal(keys[7], (D, D), dtype=jnp.float32) * 0.1,
            "bk": jax.random.normal(keys[8], (1, D), dtype=jnp.float32) * 0.1,
            # pointer_gen_W: Linear(3*D, 1), split into its three D-sized input slices
            "wp_l": jax.random.normal(keys[9], (1, D), dtype=jnp.float32) * 0.1,
            "wp_t": jax.random.normal(keys[10], (1, D), dtype=jnp.float32) * 0.1,
            "wp_e": jax.random.normal(keys[11], (1, D), dtype=jnp.float32) * 0.1,
            "bp": jnp.full((1, 1), 0.05, dtype=jnp.float32),
        }
        return (logits, query_ids, encoded_query, query_mask, encoded_tgt), params

    key = jax.random.PRNGKey(0)
    k1, k2, k3 = jax.random.split(key, 3)

    # Case 1: tiny shapes, V padded 32->128 (lane-dense output), f32 compute, auto tiles.
    args1, params1 = make_inputs(k1, B=2, T=8, S=8, D=32, V=32)
    out1 = jax.block_until_ready(
        pointer_generator(*args1, params1, compute_dtype=jnp.float32))
    ref1 = pointer_generator_reference(*args1, params1)
    assert out1.shape == ref1.shape
    err1 = float(jnp.max(jnp.abs(out1 - ref1)))
    assert err1 < 3e-2, f"f32 padded-vocab max abs diff {err1}"

    # Case 2: multi-tile T/V, exercise both resident and streamed vocab_gen paths.
    args2, params2 = make_inputs(k2, B=2, T=16, S=16, D=128, V=256)
    ref2 = pointer_generator_reference(*args2, params2)

    out2a = jax.block_until_ready(
        pointer_generator(*args2, params2, compute_dtype=jnp.float32,
                          t_tile=8, v_tile=128, resident_vocab=True))
    err2a = float(jnp.max(jnp.abs(out2a - ref2)))
    assert out2a.shape == ref2.shape and err2a < 3e-2, f"resident max abs diff {err2a}"

    out2b = jax.block_until_ready(
        pointer_generator(*args2, params2, compute_dtype=jnp.float32,
                          t_tile=8, v_tile=128, resident_vocab=False))
    err2b = float(jnp.max(jnp.abs(out2b - ref2)))
    assert err2b < 3e-2, f"streamed max abs diff {err2b}"

    # Case 2c: bf16 compute, auto tiles.
    out2c = jax.block_until_ready(
        pointer_generator(*args2, params2, compute_dtype=jnp.bfloat16))
    assert bool(jnp.all(jnp.isfinite(out2c)))
    err2c = float(jnp.max(jnp.abs(out2c - ref2)))
    assert err2c < 0.3, f"bf16 max abs diff {err2c}"

    # Case 3: non-aligned T (12) and V (200): wrapper pads both, streamed vocab tiles.
    args3, params3 = make_inputs(k3, B=2, T=12, S=8, D=64, V=200)
    ref3 = pointer_generator_reference(*args3, params3)
    out3 = jax.block_until_ready(
        pointer_generator(*args3, params3, compute_dtype=jnp.float32,
                          t_tile=8, v_tile=128, resident_vocab=False))
    err3 = float(jnp.max(jnp.abs(out3 - ref3)))
    assert out3.shape == ref3.shape and err3 < 3e-2, f"padded T/V max abs diff {err3}"

    print("KERNEL_OK")
</pallas_src>

<mosaic_0001>
module attributes {stable_mosaic.version = 11 : i64} {
  func.func @_pointer_generator_kernel(%arg0: i32, %arg1: i32, %arg2: i32, %arg3: memref<1x8x32xf32, #tpu.memory_space<vmem>>, %arg4: memref<1x8x32xf32, #tpu.memory_space<vmem>>, %arg5: memref<1x8x32xf32, #tpu.memory_space<vmem>>, %arg6: memref<1x1x8xi32, #tpu.memory_space<vmem>>, %arg7: memref<1x1x8xf32, #tpu.memory_space<vmem>>, %arg8: memref<128x32xf32, #tpu.memory_space<vmem>>, %arg9: memref<32x32xf32, #tpu.memory_space<vmem>>, %arg10: memref<1x32xf32, #tpu.memory_space<vmem>>, %arg11: memref<32x32xf32, #tpu.memory_space<vmem>>, %arg12: memref<1x32xf32, #tpu.memory_space<vmem>>, %arg13: memref<32x1xf32, #tpu.memory_space<vmem>>, %arg14: memref<32x1xf32, #tpu.memory_space<vmem>>, %arg15: memref<32x1xf32, #tpu.memory_space<vmem>>, %arg16: memref<1x1xf32, #tpu.memory_space<vmem>>, %arg17: memref<1x8x128xf32, #tpu.memory_space<vmem>>, %arg18: memref<1x8x128xf32, #tpu.memory_space<vmem>>, %arg19: memref<8x8xf32, #tpu.memory_space<vmem>>, %arg20: memref<8x1xf32, #tpu.memory_space<vmem>>, %arg21: memref<8x1xf32, #tpu.memory_space<vmem>>, %arg22: memref<8x1xf32, #tpu.memory_space<vmem>>, %arg23: memref<8x1xf32, #tpu.memory_space<vmem>>) attributes {dimension_semantics = [#tpu.dimension_semantics<parallel>, #tpu.dimension_semantics<parallel>, #tpu.dimension_semantics<arbitrary>], iteration_bounds = array<i64: 2, 1, 2>, scalar_prefetch = 0 : i64, scratch_operands = 6 : i64, tpu.core_type = #tpu.core_type<tc>, window_params = [{transform_indices = @transform_0, window_bounds = array<i64: 1, 8, 32>}, {transform_indices = @transform_1, window_bounds = array<i64: 1, 8, 32>}, {transform_indices = @transform_2, window_bounds = array<i64: 1, 8, 32>}, {transform_indices = @transform_3, window_bounds = array<i64: 1, 1, 8>}, {transform_indices = @transform_4, window_bounds = array<i64: 1, 1, 8>}, {pipeline_mode = #tpu.pipeline_mode<synchronous>, transform_indices = @transform_5, window_bounds = array<i64: 128, 32>}, {pipeline_mode = #tpu.pipeline_mode<synchronous>, transform_indices = @transform_6, window_bounds = array<i64: 32, 32>}, {pipeline_mode = #tpu.pipeline_mode<synchronous>, transform_indices = @transform_7, window_bounds = array<i64: 1, 32>}, {pipeline_mode = #tpu.pipeline_mode<synchronous>, transform_indices = @transform_8, window_bounds = array<i64: 32, 32>}, {pipeline_mode = #tpu.pipeline_mode<synchronous>, transform_indices = @transform_9, window_bounds = array<i64: 1, 32>}, {pipeline_mode = #tpu.pipeline_mode<synchronous>, transform_indices = @transform_10, window_bounds = array<i64: 32, 1>}, {pipeline_mode = #tpu.pipeline_mode<synchronous>, transform_indices = @transform_11, window_bounds = array<i64: 32, 1>}, {pipeline_mode = #tpu.pipeline_mode<synchronous>, transform_indices = @transform_12, window_bounds = array<i64: 32, 1>}, {pipeline_mode = #tpu.pipeline_mode<synchronous>, transform_indices = @transform_13, window_bounds = array<i64: 1, 1>}, {transform_indices = @transform_14, window_bounds = array<i64: 1, 8, 128>}]} {
    %c0 = arith.constant 0 : index
    %c0_0 = arith.constant 0 : index
    %c0_1 = arith.constant 0 : index
    %0 = vector.load %arg3[%c0, %c0_0, %c0_1] : memref<1x8x32xf32, #tpu.memory_space<vmem>>, vector<1x8x32xf32>
    %1 = vector.shape_cast %0 : vector<1x8x32xf32> to vector<8x32xf32>
    %c0_i32 = arith.constant 0 : i32
    %2 = arith.cmpi eq, %arg2, %c0_i32 : i32
    %3 = arith.extui %2 : i1 to i32
    %c0_i32_2 = arith.constant 0 : i32
    %4 = arith.cmpi ne, %3, %c0_i32_2 : i32
    scf.if %4 {
      %c0_6 = arith.constant 0 : index
      %c0_7 = arith.constant 0 : index
      %c0_8 = arith.constant 0 : index
      %11 = vector.load %arg4[%c0_6, %c0_7, %c0_8] : memref<1x8x32xf32, #tpu.memory_space<vmem>>, vector<1x8x32xf32>
      %12 = vector.shape_cast %11 : vector<1x8x32xf32> to vector<8x32xf32>
      %c0_9 = arith.constant 0 : index
      %c0_10 = arith.constant 0 : index
      %13 = vector.load %arg9[%c0_9, %c0_10] : memref<32x32xf32, #tpu.memory_space<vmem>>, vector<32x32xf32>
      %cst = arith.constant dense<0.000000e+00> : vector<8x32xf32>
      %14 = tpu.matmul %1, %13, %cst {dimension_numbers = #tpu.dot_dimension_numbers<[1], [0], [0], [1], [0, 0, 1, 1], [], []>} : vector<8x32xf32>, vector<32x32xf32>, vector<8x32xf32> -> vector<8x32xf32>
      %c0_11 = arith.constant 0 : index
      %c0_12 = arith.constant 0 : index
      %15 = vector.load %arg10[%c0_11, %c0_12] : memref<1x32xf32, #tpu.memory_space<vmem>>, vector<1x32xf32>
      %16 = vector.broadcast %15 : vector<1x32xf32> to vector<8x32xf32>
      %17 = arith.addf %14, %16 : vector<8x32xf32>
      %c0_13 = arith.constant 0 : index
      %c0_14 = arith.constant 0 : index
      %18 = vector.load %arg11[%c0_13, %c0_14] : memref<32x32xf32, #tpu.memory_space<vmem>>, vector<32x32xf32>
      %cst_15 = arith.constant dense<0.000000e+00> : vector<8x32xf32>
      %19 = tpu.matmul %12, %18, %cst_15 {dimension_numbers = #tpu.dot_dimension_numbers<[1], [0], [0], [1], [0, 0, 1, 1], [], []>} : vector<8x32xf32>, vector<32x32xf32>, vector<8x32xf32> -> vector<8x32xf32>
      %c0_16 = arith.constant 0 : index
      %c0_17 = arith.constant 0 : index
      %20 = vector.load %arg12[%c0_16, %c0_17] : memref<1x32xf32, #tpu.memory_space<vmem>>, vector<1x32xf32>
      %21 = vector.broadcast %20 : vector<1x32xf32> to vector<8x32xf32>
      %22 = arith.addf %19, %21 : vector<8x32xf32>
      %cst_18 = arith.constant dense<0.000000e+00> : vector<8x8xf32>
      %23 = tpu.matmul %17, %22, %cst_18 {dimension_numbers = #tpu.dot_dimension_numbers<[1], [1], [0], [0], [0, 0, 1, 0], [], []>} : vector<8x32xf32>, vector<8x32xf32>, vector<8x8xf32> -> vector<8x8xf32>
      %cst_19 = arith.constant 0.176776692 : f32
      %24 = vector.broadcast %cst_19 : f32 to vector<8x8xf32>
      %25 = arith.mulf %23, %24 : vector<8x8xf32>
      %c0_20 = arith.constant 0 : index
      %c0_21 = arith.constant 0 : index
      %c0_22 = arith.constant 0 : index
      %26 = vector.load %arg7[%c0_20, %c0_21, %c0_22] : memref<1x1x8xf32, #tpu.memory_space<vmem>>, vector<1x1x8xf32>
      %27 = vector.shape_cast %26 : vector<1x1x8xf32> to vector<1x8xf32>
      %cst_23 = arith.constant 0.000000e+00 : f32
      %28 = vector.broadcast %cst_23 : f32 to vector<1x8xf32>
      %29 = arith.cmpf oeq, %27, %28 : vector<1x8xf32>
      %cst_24 = arith.constant -1.000000e+09 : f32
      %30 = vector.shape_cast %29 : vector<1x8xi1> to vector<1x8xi1>
      %31 = vector.broadcast %30 : vector<1x8xi1> to vector<8x8xi1>
      %32 = vector.broadcast %cst_24 : f32 to vector<8x8xf32>
      %33 = arith.select %31, %32, %25 : vector<8x8xi1>, vector<8x8xf32>
      %cst_25 = arith.constant dense<0xFF800000> : vector<8xf32>
      %34 = vector.multi_reduction <maximumf>, %33, %cst_25 [1] : vector<8x8xf32> to vector<8xf32>
      %35 = vector.shape_cast %34 : vector<8xf32> to vector<8x1xf32>
      %36 = vector.broadcast %35 : vector<8x1xf32> to vector<8x8xf32>
      %37 = arith.subf %33, %36 : vector<8x8xf32>
      %38 = math.exp %37 : vector<8x8xf32>
      %cst_26 = arith.constant dense<0.000000e+00> : vector<8xf32>
      %39 = vector.multi_reduction <add>, %38, %cst_26 [1] : vector<8x8xf32> to vector<8xf32>
      %40 = vector.shape_cast %39 : vector<8xf32> to vector<8x1xf32>
      %41 = tpu.reciprocal %40 {approx = true} : vector<8x1xf32> -> vector<8x1xf32>
      %42 = vector.broadcast %41 : vector<8x1xf32> to vector<8x8xf32>
      %43 = arith.mulf %38, %42 : vector<8x8xf32>
      %cst_27 = arith.constant dense<0.000000e+00> : vector<8x32xf32>
      %44 = tpu.matmul %43, %12, %cst_27 {dimension_numbers = #tpu.dot_dimension_numbers<[1], [0], [0], [1], [0, 0, 1, 1], [], []>} : vector<8x8xf32>, vector<8x32xf32>, vector<8x32xf32> -> vector<8x32xf32>
      %c0_28 = arith.constant 0 : index
      %c0_29 = arith.constant 0 : index
      %45 = vector.load %arg13[%c0_28, %c0_29] : memref<32x1xf32, #tpu.memory_space<vmem>>, vector<32x1xf32>
      %cst_30 = arith.constant dense<0.000000e+00> : vector<8x1xf32>
      %46 = tpu.matmul %1, %45, %cst_30 {dimension_numbers = #tpu.dot_dimension_numbers<[1], [0], [0], [1], [0, 0, 1, 1], [], []>} : vector<8x32xf32>, vector<32x1xf32>, vector<8x1xf32> -> vector<8x1xf32>
      %c0_31 = arith.constant 0 : index
      %c0_32 = arith.constant 0 : index
      %47 = vector.load %arg14[%c0_31, %c0_32] : memref<32x1xf32, #tpu.memory_space<vmem>>, vector<32x1xf32>
      %cst_33 = arith.constant dense<0.000000e+00> : vector<8x1xf32>
      %48 = tpu.matmul %44, %47, %cst_33 {dimension_numbers = #tpu.dot_dimension_numbers<[1], [0], [0], [1], [0, 0, 1, 1], [], []>} : vector<8x32xf32>, vector<32x1xf32>, vector<8x1xf32> -> vector<8x1xf32>
      %49 = arith.addf %46, %48 : vector<8x1xf32>
      %c0_34 = arith.constant 0 : index
      %c0_35 = arith.constant 0 : index
      %c0_36 = arith.constant 0 : index
      %50 = vector.load %arg5[%c0_34, %c0_35, %c0_36] : memref<1x8x32xf32, #tpu.memory_space<vmem>>, vector<1x8x32xf32>
      %51 = vector.shape_cast %50 : vector<1x8x32xf32> to vector<8x32xf32>
      %c0_37 = arith.constant 0 : index
      %c0_38 = arith.constant 0 : index
      %52 = vector.load %arg15[%c0_37, %c0_38] : memref<32x1xf32, #tpu.memory_space<vmem>>, vector<32x1xf32>
      %cst_39 = arith.constant dense<0.000000e+00> : vector<8x1xf32>
      %53 = tpu.matmul %51, %52, %cst_39 {dimension_numbers = #tpu.dot_dimension_numbers<[1], [0], [0], [1], [0, 0, 1, 1], [], []>} : vector<8x32xf32>, vector<32x1xf32>, vector<8x1xf32> -> vector<8x1xf32>
      %54 = arith.addf %49, %53 : vector<8x1xf32>
      %c0_40 = arith.constant 0 : index
      %c0_41 = arith.constant 0 : index
      %55 = vector.load %arg16[%c0_40, %c0_41] : memref<1x1xf32, #tpu.memory_space<vmem>>, vector<1x1xf32>
      %56 = vector.broadcast %55 : vector<1x1xf32> to vector<8x1xf32>
      %57 = arith.addf %54, %56 : vector<8x1xf32>
      %cst_42 = arith.constant 0.000000e+00 : f32
      %58 = vector.broadcast %cst_42 : f32 to vector<8x1xf32>
      %59 = arith.subf %58, %57 : vector<8x1xf32>
      %60 = math.exp %59 : vector<8x1xf32>
      %cst_43 = arith.constant 1.000000e+00 : f32
      %61 = vector.broadcast %cst_43 : f32 to vector<8x1xf32>
      %62 = arith.addf %61, %60 : vector<8x1xf32>
      %cst_44 = arith.constant 1.000000e+00 : f32
      %63 = vector.broadcast %cst_44 : f32 to vector<8x1xf32>
      %64 = arith.divf %63, %62 : vector<8x1xf32>
      %cst_45 = arith.constant 1.000000e+00 : f32
      %65 = vector.broadcast %cst_45 : f32 to vector<8x1xf32>
      %66 = arith.subf %65, %64 : vector<8x1xf32>
      %67 = vector.broadcast %66 : vector<8x1xf32> to vector<8x8xf32>
      %68 = arith.mulf %67, %43 : vector<8x8xf32>
      %c0_46 = arith.constant 0 : index
      %c0_47 = arith.constant 0 : index
      %69 = vector.load %arg19[%c0_46, %c0_47] : memref<8x8xf32, #tpu.memory_space<vmem>>, vector<8x8xf32>
      tpu.vector_store %arg19[%c0_46, %c0_47], %68 {strides = array<i32>} : memref<8x8xf32, #tpu.memory_space<vmem>>, vector<8x8xf32>,
      %cst_48 = arith.constant 9.99999935E-39 : f32
      %70 = vector.broadcast %cst_48 : f32 to vector<8x1xf32>
      %71 = arith.maximumf %64, %70 : vector<8x1xf32>
      %72 = math.log %71 : vector<8x1xf32>
      %c0_49 = arith.constant 0 : index
      %c0_50 = arith.constant 0 : index
      %73 = vector.load %arg20[%c0_49, %c0_50] : memref<8x1xf32, #tpu.memory_space<vmem>>, vector<8x1xf32>
      tpu.vector_store %arg20[%c0_49, %c0_50], %72 {strides = array<i32>} : memref<8x1xf32, #tpu.memory_space<vmem>>, vector<8x1xf32>,
      %cst_51 = arith.constant 0xFF800000 : f32
      %74 = vector.broadcast %cst_51 : f32 to vector<8x1xf32>
      %c0_52 = arith.constant 0 : index
      %c0_53 = arith.constant 0 : index
      %75 = vector.load %arg21[%c0_52, %c0_53] : memref<8x1xf32, #tpu.memory_space<vmem>>, vector<8x1xf32>
      tpu.vector_store %arg21[%c0_52, %c0_53], %74 {strides = array<i32>} : memref<8x1xf32, #tpu.memory_space<vmem>>, vector<8x1xf32>,
      %cst_54 = arith.constant 0.000000e+00 : f32
      %76 = vector.broadcast %cst_54 : f32 to vector<8x1xf32>
      %c0_55 = arith.constant 0 : index
      %c0_56 = arith.constant 0 : index
      %77 = vector.load %arg22[%c0_55, %c0_56] : memref<8x1xf32, #tpu.memory_space<vmem>>, vector<8x1xf32>
      tpu.vector_store %arg22[%c0_55, %c0_56], %76 {strides = array<i32>} : memref<8x1xf32, #tpu.memory_space<vmem>>, vector<8x1xf32>,
    } else {
    }
    %c1_i32 = arith.constant 1 : i32
    %5 = arith.cmpi slt, %arg2, %c1_i32 : i32
    %6 = arith.extui %5 : i1 to i32
    %c0_i32_3 = arith.constant 0 : i32
    %7 = arith.cmpi ne, %6, %c0_i32_3 : i32
    scf.if %7 {
      %c128_i32 = arith.constant 128 : i32
      %11 = arith.muli %arg2, %c128_i32 : i32
      %12 = tpu.assume_multiple %11, 128 : i32
      %13 = arith.index_cast %12 : i32 to index
      %c0_6 = arith.constant 0 : index
      %14 = vector.load %arg8[%13, %c0_6] : memref<128x32xf32, #tpu.memory_space<vmem>>, vector<128x32xf32>
      %cst = arith.constant dense<0.000000e+00> : vector<8x128xf32>
      %15 = tpu.matmul %1, %14, %cst {dimension_numbers = #tpu.dot_dimension_numbers<[1], [1], [0], [0], [0, 0, 1, 0], [], []>} : vector<8x32xf32>, vector<128x32xf32>, vector<8x128xf32> -> vector<8x128xf32>
      %c128_i32_7 = arith.constant 128 : i32
      %16 = arith.muli %arg2, %c128_i32_7 : i32
      %17 = tpu.iota {dimensions = array<i32: 1>} : vector<8x128xi32>
      %18 = vector.broadcast %16 : i32 to vector<8x128xi32>
      %19 = arith.addi %18, %17 : vector<8x128xi32>
      %c32_i32 = arith.constant 32 : i32
      %20 = vector.broadcast %c32_i32 : i32 to vector<8x128xi32>
      %21 = arith.cmpi slt, %19, %20 : vector<8x128xi32>
      %cst_8 = arith.constant -1.000000e+30 : f32
      %22 = vector.broadcast %cst_8 : f32 to vector<8x128xf32>
      %23 = arith.select %21, %15, %22 : vector<8x128xi1>, vector<8x128xf32>
      %24 = arith.index_cast %arg2 : i32 to index
      %c0_9 = arith.constant 0 : index
      %c0_10 = arith.constant 0 : index
      %25 = vector.load %arg18[%24, %c0_9, %c0_10] : memref<1x8x128xf32, #tpu.memory_space<vmem>>, vector<1x8x128xf32>
      %26 = vector.shape_cast %25 : vector<1x8x128xf32> to vector<8x128xf32>
      %27 = vector.shape_cast %23 : vector<8x128xf32> to vector<1x8x128xf32>
      tpu.vector_store %arg18[%24, %c0_9, %c0_10], %27 {strides = array<i32>} : memref<1x8x128xf32, #tpu.memory_space<vmem>>, vector<1x8x128xf32>,
      %cst_11 = arith.constant dense<0xFF800000> : vector<8xf32>
      %28 = vector.multi_reduction <maximumf>, %23, %cst_11 [1] : vector<8x128xf32> to vector<8xf32>
      %29 = vector.shape_cast %28 : vector<8xf32> to vector<8x1xf32>
      %c0_12 = arith.constant 0 : index
      %c0_13 = arith.constant 0 : index
      %30 = vector.load %arg21[%c0_12, %c0_13] : memref<8x1xf32, #tpu.memory_space<vmem>>, vector<8x1xf32>
      %31 = arith.maximumf %30, %29 : vector<8x1xf32>
      %c0_14 = arith.constant 0 : index
      %c0_15 = arith.constant 0 : index
      %32 = vector.load %arg22[%c0_14, %c0_15] : memref<8x1xf32, #tpu.memory_space<vmem>>, vector<8x1xf32>
      %c0_16 = arith.constant 0 : index
      %c0_17 = arith.constant 0 : index
      %33 = vector.load %arg21[%c0_16, %c0_17] : memref<8x1xf32, #tpu.memory_space<vmem>>, vector<8x1xf32>
      %34 = arith.subf %33, %31 : vector<8x1xf32>
      %35 = math.exp %34 : vector<8x1xf32>
      %36 = arith.mulf %32, %35 : vector<8x1xf32>
      %37 = vector.broadcast %31 : vector<8x1xf32> to vector<8x128xf32>
      %38 = arith.subf %23, %37 : vector<8x128xf32>
      %39 = math.exp %38 : vector<8x128xf32>
      %cst_18 = arith.constant dense<0.000000e+00> : vector<8xf32>
      %40 = vector.multi_reduction <add>, %39, %cst_18 [1] : vector<8x128xf32> to vector<8xf32>
      %41 = vector.shape_cast %40 : vector<8xf32> to vector<8x1xf32>
      %42 = arith.addf %36, %41 : vector<8x1xf32>
      %c0_19 = arith.constant 0 : index
      %c0_20 = arith.constant 0 : index
      %43 = vector.load %arg22[%c0_19, %c0_20] : memref<8x1xf32, #tpu.memory_space<vmem>>, vector<8x1xf32>
      tpu.vector_store %arg22[%c0_19, %c0_20], %42 {strides = array<i32>} : memref<8x1xf32, #tpu.memory_space<vmem>>, vector<8x1xf32>,
      %c0_21 = arith.constant 0 : index
      %c0_22 = arith.constant 0 : index
      %44 = vector.load %arg21[%c0_21, %c0_22] : memref<8x1xf32, #tpu.memory_space<vmem>>, vector<8x1xf32>
      tpu.vector_store %arg21[%c0_21, %c0_22], %31 {strides = array<i32>} : memref<8x1xf32, #tpu.memory_space<vmem>>, vector<8x1xf32>,
      %c0_i32_23 = arith.constant 0 : i32
      %45 = arith.cmpi eq, %arg2, %c0_i32_23 : i32
      %46 = arith.extui %45 : i1 to i32
      %c0_i32_24 = arith.constant 0 : i32
      %47 = arith.cmpi ne, %46, %c0_i32_24 : i32
      scf.if %47 {
        %c0_25 = arith.constant 0 : index
        %c0_26 = arith.constant 0 : index
        %48 = vector.load %arg21[%c0_25, %c0_26] : memref<8x1xf32, #tpu.memory_space<vmem>>, vector<8x1xf32>
        %c0_27 = arith.constant 0 : index
        %c0_28 = arith.constant 0 : index
        %49 = vector.load %arg22[%c0_27, %c0_28] : memref<8x1xf32, #tpu.memory_space<vmem>>, vector<8x1xf32>
        %50 = math.log %49 : vector<8x1xf32>
        %51 = arith.addf %48, %50 : vector<8x1xf32>
        %c0_29 = arith.constant 0 : index
        %c0_30 = arith.constant 0 : index
        %52 = vector.load %arg23[%c0_29, %c0_30] : memref<8x1xf32, #tpu.memory_space<vmem>>, vector<8x1xf32>
        tpu.vector_store %arg23[%c0_29, %c0_30], %51 {strides = array<i32>} : memref<8x1xf32, #tpu.memory_space<vmem>>, vector<8x1xf32>,
      } else {
      }
    } else {
    }
    %c1_i32_4 = arith.constant 1 : i32
    %8 = arith.cmpi sge, %arg2, %c1_i32_4 : i32
    %9 = arith.extui %8 : i1 to i32
    %c0_i32_5 = arith.constant 0 : i32
    %10 = arith.cmpi ne, %9, %c0_i32_5 : i32
    scf.if %10 {
      %c1_i32_6 = arith.constant 1 : i32
      %11 = arith.subi %arg2, %c1_i32_6 : i32
      %12 = arith.index_cast %11 : i32 to index
      %c0_7 = arith.constant 0 : index
      %c0_8 = arith.constant 0 : index
      %13 = vector.load %arg18[%12, %c0_7, %c0_8] : memref<1x8x128xf32, #tpu.memory_space<vmem>>, vector<1x8x128xf32>
      %14 = vector.shape_cast %13 : vector<1x8x128xf32> to vector<8x128xf32>
      %c0_9 = arith.constant 0 : index
      %c0_10 = arith.constant 0 : index
      %15 = vector.load %arg23[%c0_9, %c0_10] : memref<8x1xf32, #tpu.memory_space<vmem>>, vector<8x1xf32>
      %16 = vector.broadcast %15 : vector<8x1xf32> to vector<8x128xf32>
      %17 = arith.subf %14, %16 : vector<8x128xf32>
      %c0_11 = arith.constant 0 : index
      %c0_12 = arith.constant 0 : index
      %18 = vector.load %arg20[%c0_11, %c0_12] : memref<8x1xf32, #tpu.memory_space<vmem>>, vector<8x1xf32>
      %19 = vector.broadcast %18 : vector<8x1xf32> to vector<8x128xf32>
      %20 = arith.addf %17, %19 : vector<8x128xf32>
      %21 = math.exp %20 : vector<8x128xf32>
      %c0_13 = arith.constant 0 : index
      %c0_14 = arith.constant 0 : index
      %c0_15 = arith.constant 0 : index
      %22 = vector.load %arg6[%c0_13, %c0_14, %c0_15] : memref<1x1x8xi32, #tpu.memory_space<vmem>>, vector<1x1x8xi32>
      %23 = vector.shape_cast %22 : vector<1x1x8xi32> to vector<1x8xi32>
      %24 = tpu.iota {dimensions = array<i32: 0>} : vector<128x8xi32>
      %c128_i32 = arith.constant 128 : i32
      %25 = arith.muli %11, %c128_i32 : i32
      %26 = vector.broadcast %25 : i32 to vector<1x8xi32>
      %27 = arith.subi %23, %26 : vector<1x8xi32>
      %28 = vector.broadcast %27 : vector<1x8xi32> to vector<128x8xi32>
      %29 = arith.cmpi eq, %24, %28 : vector<128x8xi32>
      %30 = arith.extui %29 : vector<128x8xi1> to vector<128x8xi32>
      %31 = arith.sitofp %30 : vector<128x8xi32> to vector<128x8xf32>
      %c0_16 = arith.constant 0 : index
      %c0_17 = arith.constant 0 : index
      %32 = vector.load %arg19[%c0_16, %c0_17] : memref<8x8xf32, #tpu.memory_space<vmem>>, vector<8x8xf32>
      %cst = arith.constant dense<0.000000e+00> : vector<8x128xf32>
      %33 = tpu.matmul %32, %31, %cst {dimension_numbers = #tpu.dot_dimension_numbers<[1], [1], [0], [0], [0, 0, 1, 0], [], []>} : vector<8x8xf32>, vector<128x8xf32>, vector<8x128xf32> -> vector<8x128xf32>
      %34 = arith.addf %33, %21 : vector<8x128xf32>
      %cst_18 = arith.constant 1.000000e-30 : f32
      %35 = vector.broadcast %cst_18 : f32 to vector<8x128xf32>
      %36 = arith.addf %34, %35 : vector<8x128xf32>
      %37 = math.log %36 : vector<8x128xf32>
      %c0_19 = arith.constant 0 : index
      %c0_20 = arith.constant 0 : index
      %c0_21 = arith.constant 0 : index
      %38 = vector.load %arg17[%c0_19, %c0_20, %c0_21] : memref<1x8x128xf32, #tpu.memory_space<vmem>>, vector<1x8x128xf32>
      %39 = vector.shape_cast %38 : vector<1x8x128xf32> to vector<8x128xf32>
      %40 = vector.shape_cast %37 : vector<8x128xf32> to vector<1x8x128xf32>
      tpu.vector_store %arg17[%c0_19, %c0_20, %c0_21], %40 {strides = array<i32>} : memref<1x8x128xf32, #tpu.memory_space<vmem>>, vector<1x8x128xf32>,
    } else {
    }
    return
  }
  func.func @transform_0(%arg0: i32, %arg1: i32, %arg2: i32) -> (i32, i32, i32) {
    %c0_i32 = arith.constant 0 : i32
    %c0_i32_0 = arith.constant 0 : i32
    return %arg0, %arg1, %c0_i32 : i32, i32, i32
  }
  func.func @transform_1(%arg0: i32, %arg1: i32, %arg2: i32) -> (i32, i32, i32) {
    %c0_i32 = arith.constant 0 : i32
    %c0_i32_0 = arith.constant 0 : i32
    %c0_i32_1 = arith.constant 0 : i32
    return %arg0, %c0_i32, %c0_i32_0 : i32, i32, i32
  }
  func.func @transform_2(%arg0: i32, %arg1: i32, %arg2: i32) -> (i32, i32, i32) {
    %c0_i32 = arith.constant 0 : i32
    %c0_i32_0 = arith.constant 0 : i32
    return %arg0, %arg1, %c0_i32 : i32, i32, i32
  }
  func.func @transform_3(%arg0: i32, %arg1: i32, %arg2: i32) -> (i32, i32, i32) {
    %c0_i32 = arith.constant 0 : i32
    %c0_i32_0 = arith.constant 0 : i32
    %c0_i32_1 = arith.constant 0 : i32
    return %arg0, %c0_i32, %c0_i32_0 : i32, i32, i32
  }
  func.func @transform_4(%arg0: i32, %arg1: i32, %arg2: i32) -> (i32, i32, i32) {
    %c0_i32 = arith.constant 0 : i32
    %c0_i32_0 = arith.constant 0 : i32
    %c0_i32_1 = arith.constant 0 : i32
    return %arg0, %c0_i32, %c0_i32_0 : i32, i32, i32
  }
  func.func @transform_5(%arg0: i32, %arg1: i32, %arg2: i32) -> (i32, i32) {
    %c0_i32 = arith.constant 0 : i32
    %c0_i32_0 = arith.constant 0 : i32
    %c0_i32_1 = arith.constant 0 : i32
    return %c0_i32, %c0_i32_0 : i32, i32
  }
  func.func @transform_6(%arg0: i32, %arg1: i32, %arg2: i32) -> (i32, i32) {
    %c0_i32 = arith.constant 0 : i32
    %c0_i32_0 = arith.constant 0 : i32
    %c0_i32_1 = arith.constant 0 : i32
    return %c0_i32, %c0_i32_0 : i32, i32
  }
  func.func @transform_7(%arg0: i32, %arg1: i32, %arg2: i32) -> (i32, i32) {
    %c0_i32 = arith.constant 0 : i32
    %c0_i32_0 = arith.constant 0 : i32
    %c0_i32_1 = arith.constant 0 : i32
    return %c0_i32, %c0_i32_0 : i32, i32
  }
  func.func @transform_8(%arg0: i32, %arg1: i32, %arg2: i32) -> (i32, i32) {
    %c0_i32 = arith.constant 0 : i32
    %c0_i32_0 = arith.constant 0 : i32
    %c0_i32_1 = arith.constant 0 : i32
    return %c0_i32, %c0_i32_0 : i32, i32
  }
  func.func @transform_9(%arg0: i32, %arg1: i32, %arg2: i32) -> (i32, i32) {
    %c0_i32 = arith.constant 0 : i32
    %c0_i32_0 = arith.constant 0 : i32
    %c0_i32_1 = arith.constant 0 : i32
    return %c0_i32, %c0_i32_0 : i32, i32
  }
  func.func @transform_10(%arg0: i32, %arg1: i32, %arg2: i32) -> (i32, i32) {
    %c0_i32 = arith.constant 0 : i32
    %c0_i32_0 = arith.constant 0 : i32
    %c0_i32_1 = arith.constant 0 : i32
    return %c0_i32, %c0_i32_0 : i32, i32
  }
  func.func @transform_11(%arg0: i32, %arg1: i32, %arg2: i32) -> (i32, i32) {
    %c0_i32 = arith.constant 0 : i32
    %c0_i32_0 = arith.constant 0 : i32
    %c0_i32_1 = arith.constant 0 : i32
    return %c0_i32, %c0_i32_0 : i32, i32
  }
  func.func @transform_12(%arg0: i32, %arg1: i32, %arg2: i32) -> (i32, i32) {
    %c0_i32 = arith.constant 0 : i32
    %c0_i32_0 = arith.constant 0 : i32
    %c0_i32_1 = arith.constant 0 : i32
    return %c0_i32, %c0_i32_0 : i32, i32
  }
  func.func @transform_13(%arg0: i32, %arg1: i32, %arg2: i32) -> (i32, i32) {
    %c0_i32 = arith.constant 0 : i32
    %c0_i32_0 = arith.constant 0 : i32
    %c0_i32_1 = arith.constant 0 : i32
    return %c0_i32, %c0_i32_0 : i32, i32
  }
  func.func @transform_14(%arg0: i32, %arg1: i32, %arg2: i32) -> (i32, i32, i32) {
    %c1_i32 = arith.constant 1 : i32
    %0 = arith.subi %arg2, %c1_i32 : i32
    %c0_i32 = arith.constant 0 : i32
    %1 = arith.maxsi %0, %c0_i32 : i32
    %c0_i32_0 = arith.constant 0 : i32
    return %arg0, %arg1, %1 : i32, i32, i32
  }
}

</mosaic_0001>

<bundles_post_ra>
// kernel: tpu_custom_call.1
= control target key start
LH: loop header
LB: loop body
LE: loop exit
PB: predicated region body
PF: predicated region fallthrough
CT: control target
= control target key end

     0   :  { %s2039_s0 = inlined_call_operand.vmem [shape: f32[2,8,32], index: 0, kind: input, shape index: {}]   ;;  %s2040_s1 = inlined_call_operand.vmem [shape: f32[2,8,32], index: 1, kind: input, shape index: {}]   ;;  %s2041_s2 = inlined_call_operand.vmem [shape: f32[2,8,32], index: 2, kind: input, shape index: {}]   ;;  %s2042_s3 = inlined_call_operand.vmem [shape: s32[2,1,8], index: 3, kind: input, shape index: {}]   ;;  %s2043_s4 = inlined_call_operand.vmem [shape: f32[2,1,8], index: 4, kind: input, shape index: {}]   ;;  %s2044_s5 = inlined_call_operand.vmem [shape: f32[128,32], index: 5, kind: input, shape index: {}]   ;;  %s2045_s6 = inlined_call_operand.vmem [shape: f32[32,32], index: 6, kind: input, shape index: {}]   ;;  %s2046_s7 = inlined_call_operand.vmem [shape: f32[1,32], index: 7, kind: input, shape index: {}]   ;;  %s2047_s8 = inlined_call_operand.vmem [shape: f32[32,32], index: 8, kind: input, shape index: {}]   ;;  %s2048_s9 = inlined_call_operand.vmem [shape: f32[1,32], index: 9, kind: input, shape index: {}]   ;;  %s2049_s10 = inlined_call_operand.vmem [shape: f32[32,1], index: 10, kind: input, shape index: {}]   ;;  %s2050_s11 = inlined_call_operand.vmem [shape: f32[32,1], index: 11, kind: input, shape index: {}]   ;;  %s2051_s12 = inlined_call_operand.vmem [shape: f32[32,1], index: 12, kind: input, shape index: {}]   ;;  %s2052_s13 = inlined_call_operand.<no memory space> [shape: f32[1,1], index: 13, kind: input, shape index: {}]   ;;  %s2053_s14 = inlined_call_operand.hbm [shape: f32[2,8,128], index: 14, kind: output, shape index: {}]  }
   0x1   :  { %2068 = sst [smem:[#allocation24_spill]] %s2039_s0  ;;  %v19_v0 = vstv %s2052_s13 }
   0x2   :  { %2069 = sst [smem:[#allocation25_spill]] %s2053_s14  ;;  %20 = vst [vmem:[#allocation8] sm:$0x1] %v19_v0 }
   0x3   :  { %21 = vsyncpa [#allocation10], 0 }
   0x4   :  { %23 = vsyncpa [#allocation10 + $0x1], 0  ;;  %s1660_s15 = smov 0   ;;  %s1662_s16 = smov 0  }
   0x5   :  { %s1664_s17 = smov 0   ;;  %s1666_s18 = smov 0  }
   0x6   :  { %s1668_s19 = smov 0   ;;  %s1670_s20 = smov 0  }
   0x7   :  { %s1672_s21 = smov 0   ;;  %s1674_s22 = smov 0  }
   0x8 LB: > { %2070 = sst [smem:[#allocation12_spill]] %s1546_s15  ;;  %s1293_s13 = sadd.s32 4294967295, %s1574_s22   ;;  %s1574_s22 = sphi %s1674_s22, %s29_s22   ;;  %s1570_s21 = sphi %s1672_s21, %s2101_s21   ;;  %s1566_s20 = sphi %s1670_s20, %s2100_s20   ;;  %s1562_s19 = sphi %s1668_s19, %s2099_s19   ;;  %s1558_s18 = sphi %s1666_s18, %s2098_s18   ;;  %s1554_s17 = sphi %s1664_s17, %s2097_s17   ;;  %s1550_s16 = sphi %s1662_s16, %s2096_s16   ;;  %s1546_s15 = sphi %s1660_s15, %s2095_s15  }
   0x9   : > { %2071 = sst [smem:[#allocation13_spill]] %s1550_s16  ;;  %s1294_s23 = sadd.s32 4294967294, %s1574_s22  }
   0xa   : > { %2072 = sst [smem:[#allocation14_spill]] %s1554_s17  ;;  %s41_s24 = sadd.s32 1, %s1566_s20 }
   0xb   : > { %2073 = sst [smem:[#allocation15_spill]] %s1562_s19  ;;  %s48_s25 = sadd.s32 1, %s1570_s21 }
   0xc   : > { %2074 = sst [smem:[#allocation16_spill]] %s1566_s20  ;;  %p42_p0 = scmp.ge.s32.totalorder %s41_s24, 2 }
   0xd   : > { %2075 = sst [smem:[#allocation17_spill]] %s1570_s21  ;;  %s388_s26 = sadd.s32 1, %s1554_s17 }
   0xe   : > { %2076 = sst [smem:[#allocation18_spill]] %s1574_s22  ;;  %s2103_s24 = smov (%p42_p0, %s41_s24), 0 }
   0xf   : > { %2077 = sst [smem:[#allocation19_spill]] %s2103_s24  ;;  %s2105_s25 = smov (!%p42_p0, %s48_s25), %s1570_s21 }
  0x10   : > { %p50_p1 = scmp.ge.s32.totalorder %s2105_s25, 2  ;;  %p398_p2 = scmp.ne.s32.totalorder %s1554_s17, %s1550_s16 }
  0x11   : > { %p399_p3 = scmp.eq.s32.totalorder %s1293_s13, 3  ;;  %p404_p4 = scmp.ne.s32.totalorder %s1550_s16, %s1546_s15 }
  0x12   : > { %s2107_s25 = smov (%p50_p1, %s2105_s25), 0  ;;  %p405_p7 = scmp.eq.s32.totalorder %s1294_s23, 3 }
  0x13   : > { %2078 = sst [smem:[#allocation20_spill]] %s2107_s25  ;;  %s381_s27 = ssub.s32 %s1570_s21, %s2107_s25 }
  0x14   : > { %p1716_p5 = por %p399_p3, %p398_p2  ;;  %p386_p6 = scmp.eq.s32.totalorder %s381_s27, 0 }
  0x15   : > { %p1299_p8 = scmp.ge.s32.totalorder %s1574_s22, 1  ;;  %p489_p9 = scmp.lt.s32.totalorder %s1574_s22, 5 }
  0x16   : > { %s2079_s28 = scalar_select %p1716_p5, 1, 0 }
  0x17   : > { %s1723_s29 = scalar_select %p386_p6, %s1554_s17, %s388_s26  }
  0x18   : > { %2080 = sst [smem:[#allocation21_spill]] %s2079_s28  ;;  %p1725_p10 = por %p405_p7, %p404_p4 }
  0x19   : > { %2081 = sst [smem:[#allocation22_spill]] %s1723_s29  ;;  %p490_p11 = pnand %p1299_p8, %p489_p9 }
  0x1a   : > { %s2082_s30 = scalar_select %p1725_p10, 1, 0 }
  0x1b   : > { %493 = sbr.rel (%p490_p11) target bundleno = 1806 (0x70e), region = 76  ;;  %s2057_s13 = sand.u32 (!%p490_p11), 1, %s1550_s16  }
  0x1c   : > { %2083 = sst [smem:[#allocation23_spill]] %s2082_s30  ;;  %p554_p12 = scmp.lt.s32.totalorder (!%p490_p11), %s1562_s19, 1 }
  0x1d   : > { %s1733_s25 = sshll.u32 (!%p490_p11), %s2057_s13, 3  ;;  %s2084_s0 = sld [smem:[#allocation24_spill]] (!%p490_p11) }
  0x1e   : > { %p1304_p13 = scmp.ne.s32.totalorder (!%p490_p11), %s1558_s18, 0 }
  0x20   : > { %s1736_s23 = scalar_select %p554_p12, %s1562_s19, 1 }
  0x21   : > { %585 = sbr.rel (%p1304_p13) target bundleno = 986 (0x3da), region = 80 }
  0x22   : > { %s1739_s26 = sshll.u32 %s1736_s23, 3  ;;  %s574_s21 = scalar_lea.vmem %s2042_s3, %s1736_s23 }
  0x23   : > { %s560_s13 = scalar_lea.vmem %s2084_s0, %s1739_s26  ;;  %s564_s15 = scalar_lea.vmem %s2040_s1, %s1739_s26 }
  0x24   : > { %s571_s28 = scalar_lea.vmem %s2041_s2, %s1739_s26  ;;  %s577_s24 = scalar_lea.vmem %s2043_s4, %s1736_s23  ;;  %v1761_v1 = vld [vmem:[%s560_s13] sm:$0xff] }
  0x26   : > { %v622_v2 = vld [vmem:[%s2047_s8 + $0x18] sm:$0xff]  ;;  %v621_v3 = vld [vmem:[%s2047_s8 + $0x10] sm:$0xff]  ;;  %v620_v6 = vld [vmem:[%s2047_s8 + $0x8] sm:$0xff]  ;;  %vm595_vm0 = vcmask 261120   ;;  %v1576_v17 = vmov 0   ;;  %vm683_vm3 = vcmask 64512  }
  0x27   : > { %v590_v4 = vld [vmem:[%s2045_s6 + $0x18] sm:$0xff]  ;;  %642 = vmatpush.msra.mxu1 %v622_v2  ;;  %v589_v5 = vld [vmem:[%s2045_s6 + $0x10] sm:$0xff]  ;;  %v588_v7 = vld [vmem:[%s2045_s6 + $0x8] sm:$0xff]  ;;  %1453 = vset.pattern.permute.xlu1 %v1576_v17  ;;  %vm833_vm4 = vcmask 7168   ;;  %v1577_v57 = vmov -inf   ;;  %v1578_v59 = vmov 0.0  }
  0x28   : > { %611 = vmatpush.msra.mxu0 %v590_v4  ;;  %v586_v8 = vld [vmem:[%s564_s15] sm:$0xff]  ;;  %1454 = vset.pattern.permute.xlu0 %v1576_v17  ;;  %v725_v30 = vld [vmem:[%s2050_s11 + $0x18] sm:$0xff]  ;;  %v724_v32 = vld [vmem:[%s2050_s11 + $0x10] sm:$0xff]  ;;  %835 = vst.msk [vmem:[#allocation5] sm:$0xff] %vm833_vm4, %v1577_v57 }
  0x29   : > { %643 = vmatpush.msra.mxu1 %v621_v3  ;;  %v619_v9 = vld [vmem:[%s2047_s8] sm:$0xff]  ;;  %713 = vmatpush.msra.mxu3 %v586_v8  ;;  %v721_v31 = vld [vmem:[%s2049_s10 + $0x18] sm:$0xff]  ;;  %v720_v33 = vld [vmem:[%s2049_s10 + $0x10] sm:$0xff]  ;;  %836 = vst.msk [vmem:[#allocation6] sm:$0xff] %vm833_vm4, %v1578_v59 }
  0x2a   : > { %612 = vmatpush.msra.mxu0 %v589_v5  ;;  %v587_v10 = vld [vmem:[%s2045_s6] sm:$0xff]  ;;  %v723_v34 = vld [vmem:[%s2050_s11 + $0x8] sm:$0xff]  ;;  %v773_v41 = vld [vmem:[%s2051_s12 + $0x18] sm:$0xff] }
  0x2b   : > { %644 = vmatpush.msra.mxu1 %v620_v6  ;;  %v1455_v11 = vld [vmem:[%s2048_s9] ss:$0 sm:$0xff]  ;;  %741 = vmatpush.msrb.mxu3 %v725_v30  ;;  %v719_v35 = vld [vmem:[%s2049_s10 + $0x8] sm:$0xff]  ;;  %v772_v42 = vld [vmem:[%s2051_s12 + $0x10] sm:$0xff] }
  0x2c   : > { %613 = vmatpush.msra.mxu0 %v588_v7  ;;  %v1456_v12 = vld [vmem:[%s2046_s7] ss:$0 sm:$0xff]  ;;  %v771_v43 = vld [vmem:[%s2051_s12 + $0x8] sm:$0xff]  ;;  %v1457_v51 = vld [vmem:[#allocation8] ss:$0 sm:$0xff] }
  0x2d   : > { %645 = vmatpush.msra.mxu1 %v619_v9  ;;  %v677_v18 = vld [vmem:[%s577_s24] sm:$0x1]  ;;  %742 = vmatpush.msrb.mxu3 %v724_v32 }
  0x2e   : > { %614 = vmatpush.msra.mxu0 %v587_v10  ;;  %1306 = vmatmul.msk.f32.vlgmr.msra.gmra.mxu1 %vm595_vm0, %v586_v8  ;;  %vm678_vm1 = vcmp.eq.f32.partialorder %v677_v18, 0.0  ;;  %v722_v36 = vld [vmem:[%s2050_s11] sm:$0xff] }
  0x2f   : > { %1305 = vmatmul.msk.f32.vlgmr.msra.gmra.mxu0 %vm595_vm0, %v1761_v1  ;;  %v679_v19 = vsel %vm678_vm1, 1, %v1576_v17  ;;  %v718_v37 = vld [vmem:[%s2049_s10] sm:$0xff]  ;;  %743 = vmatpush.msrb.mxu3 %v723_v34 }
  0x30   : > { %v680_v20 = vperm.slane %v679_v19, 0  ;;  %789 = vmatpush.msrb.mxu0 %v773_v41  ;;  %v770_v44 = vld [vmem:[%s2051_s12] sm:$0xff] }
  0x31   : > { %744 = vmatpush.msrb.mxu3 %v722_v36  ;;  %v769_v45 = vld [vmem:[%s571_s28] sm:$0xff] }
  0x32   : > { %vm681_vm2 = vcmp.eq.s32.totalorder %v680_v20, 1  ;;  %790 = vmatpush.msrb.mxu0 %v772_v42 }
  0x34   : > { %791 = vmatpush.msrb.mxu0 %v771_v43 }
  0x36   : > { %792 = vmatpush.msrb.mxu0 %v770_v44 }
  0x37   : > { %1312 = vmatmul.msk.f32.vlgmr.msrb.gmra.mxu0 %vm595_vm0, %v769_v45 }
  0xab   : > { %v647_v13 = vpop.f32.mrf.mxu1 }
  0xac   : > { %v616_v14 = vpop.f32.mrf.mxu0  ;;  %v648_v15 = vadd.f32 %v1455_v11, %v647_v13 }
  0xad   : > { %v617_v16 = vadd.f32 %v1456_v12, %v616_v14 }
  0xae   : > { %1307 = vmatpush.xpose.msk.msra.mxu2 %vm595_vm0, %v648_v15 }
  0xb1   : > { %1308 = vmatmul.msk.f32.vlgmr.msra.gmra.mxu2 %vm595_vm0, %v617_v16 }
  0xb2   : > { %761 = vmatpush.msrb.mxu2 %v721_v31 }
  0xb4   : > { %762 = vmatpush.msrb.mxu2 %v720_v33  ;;  %v794_v49 = vpop.f32.mrf.mxu0 }
  0xb6   : > { %763 = vmatpush.msrb.mxu2 %v719_v35 }
  0xb8   : > { %764 = vmatpush.msrb.mxu2 %v718_v37 }
  0xb9   : > { %1311 = vmatmul.msk.f32.vlgmr.msrb.gmra.mxu2 %vm595_vm0, %v1761_v1 }
 0x134   : > { %v673_v21 = vpop.f32.mrf.mxu2 }
 0x135   : > { %v676_v22 = vmul.f32 0.17677669, %v673_v21 }
 0x137   : > { %v682_v23 = vsel %vm681_vm2, -1e+09, %v676_v22 }
 0x138   : > { %v684_v24 = vsel %vm683_vm3, %v682_v23, -inf }
 0x139   : > { %685 = vmax.xlane.f32.xlu0 %v684_v24 }
 0x13c   : > { %v766_v47 = vpop.f32.mrf.mxu2 }
 0x1ac   : > { %v686_v25 = vpop.xlane.xlu0 %685 }
 0x1ad   : > { %v687_v26 = vsub.f32 %v682_v23, %v686_v25 }
 0x1af   : > { %v688_v27 = vmul.f32 1.442695, %v687_v26 }
 0x1b1   : > { %1458 = vpow2.f32 %v688_v27 }
 0x1b7   : > { %v1459_v28 = vpop.eup %1458 }
 0x1b8   : > { %v690_v29 = vsel %vm683_vm3, %v1459_v28, 0.0 }
 0x1b9   : > { %691 = vadd.xlane.f32.xlu0 %v690_v29 }
 0x22c   : > { %v692_v38 = vpop.xlane.xlu0 %691 }
 0x22d   : > { %1460 = vrcp.f32 %v692_v38 }
 0x233   : > { %v1461_v39 = vpop.eup %1460 }
 0x234   : > { %v694_v40 = vmul.f32 %v1461_v39, %v1459_v28 }
 0x236   : > { %1309 = vmatmul.msk.f32.vlgmr.msra.gmra.mxu3 %vm683_vm3, %v694_v40 }
 0x2b9   : > { %v715_v46 = vpop.f32.mrf.mxu3 }
 0x2ba   : > { %1310 = vmatmul.msk.f32.vlgmr.msrb.gmra.mxu3 %vm595_vm0, %v715_v46 }
 0x33d   : > { %v746_v48 = vpop.f32.mrf.mxu3 }
 0x33e   : > { %v767_v50 = vadd.f32 %v766_v47, %v746_v48 }
 0x340   : > { %v797_v52 = vadd.f32 %v794_v49, %v767_v50 }
 0x342   : > { %v802_v53 = vadd.f32 %v1457_v51, %v797_v52 }
 0x344   : > { %v803_v54 = vsub.f32 0.0, %v802_v53 }
 0x346   : > { %v804_v55 = vmul.f32 1.442695, %v803_v54 }
 0x348   : > { %1462 = vpow2.f32 %v804_v55 }
 0x34e   : > { %v1463_v56 = vpop.eup %1462 }
 0x34f   : > { %v806_v58 = vadd.f32 1.0, %v1463_v56 }
 0x351   : > { %1464 = vrcp.f32 %v806_v58  ;;  %v818_v63 = vand.u32 2147483648, %v806_v58  ;;  %v816_v2 = vand.u32 2147483647, %v806_v58  ;;  %vm812_vm6 = vweird.f32 %v806_v58 }
 0x353   : > { %v819_v4 = vor.u32 1.1754944e-38, %v818_v63  ;;  %vm817_vm8 = vcmp.eq.f32.partialorder %v816_v2, 8.507059e+37 }
 0x357   : > { %v1465_v60 = vpop.eup %1464 }
 0x358   : > { %v808_v61 = vmul.f32 %v1465_v60, %v806_v58  ;;  %vm813_vm5 = vweird.f32 %v1465_v60 }
 0x359   : > { %vm814_vm7 = vmor %vm812_vm6, %vm813_vm5 }
 0x35a   : > { %v809_v62 = vsub.f32 1.0, %v808_v61 }
 0x35c   : > { %v810_v0 = vmul.f32 %v1465_v60, %v809_v62 }
 0x35e   : > { %v811_v3 = vadd.f32 %v1465_v60, %v810_v0 }
 0x360   : > { %v815_v5 = vsel %vm814_vm7, %v1465_v60, %v811_v3 }
 0x361   : > { %v820_v6 = vsel %vm817_vm8, %v819_v4, %v815_v5 }
 0x362   : > { %v822_v7 = vsub.f32 1.0, %v820_v6  ;;  %v830_v8 = vmax.f32 %v820_v6, 1e-38 }
 0x364   : > { %1466 = vlog2.f32 %v830_v8  ;;  %825 = vperm.xlu1 %1453, %v822_v7  }
 0x36a   : > { %v1467_v9 = vpop.eup %1466 }
 0x36b   : > { %v832_v10 = vmul.f32 0.6931472, %v1467_v9 }
 0x36d   : > { %834 = vst.msk [vmem:[#allocation4] sm:$0xff] %vm833_vm4, %v832_v10 }
 0x3d6   : > { %v826_v11 = vpop.permute.xlu1 %825 }
 0x3d7   : > { %v828_v12 = vmul.f32 %v826_v11, %v694_v40 }
 0x3d9   : > { %829 = vst.msk [vmem:[#allocation3] sm:$0xff] %vm683_vm3, %v828_v12 }
 0x3da PF: > { %p1313_p0 = scmp.ge.s32.totalorder %s1558_s18, 1 }
 0x3db   : > { %s1314_s28 = sshll.u32 (!%p1313_p0), %s1558_s18, 7  ;;  %s1332_s14 = sshll.u32 (!%p1313_p0), %s1558_s18, 3 }
 0x3dc   : > { %840 = sbr.rel (%p1313_p0) target bundleno = 1566 (0x61e), region = 84  ;;  %s1866_s30 = scalar_lea.vmem (!%p1313_p0), %s2044_s5, %s1314_s28 }
 0x3dd   : > { %s938_s22 = scalar_lea.vmem (!%p1313_p0), [#allocation2], %s1332_s14 }
 0x3e1   : > { %vm859_vm9 = vcmask 261120   ;;  %v858_v13 = vld [vmem:[%s1866_s30 + $0x78] sm:$0xff]  ;;  %v857_v14 = vld [vmem:[%s1866_s30 + $0x70] sm:$0xff]  ;;  %v856_v15 = vld [vmem:[%s1866_s30 + $0x68] sm:$0xff]  ;;  %v931_v29 = vlaneseq  ;;  %v933_v31 = vstv %s1314_s28  ;;  %v1579_v35 = vmov 0  }
 0x3e2   : > { %1315 = vmatpush.xpose.msk.msra.mxu0 %vm859_vm9, %v858_v13  ;;  %v855_v16 = vld [vmem:[%s1866_s30 + $0x60] sm:$0xff]  ;;  %v854_v17 = vld [vmem:[%s1866_s30 + $0x58] sm:$0xff]  ;;  %v853_v18 = vld [vmem:[%s1866_s30 + $0x50] sm:$0xff]  ;;  %1468 = vset.pattern.permute.xlu0 %v1579_v35  ;;  %vm960_vm11 = vcmask 7168  }
 0x3e3   : > { %v852_v19 = vld [vmem:[%s1866_s30 + $0x48] sm:$0xff]  ;;  %v851_v20 = vld [vmem:[%s1866_s30 + $0x40] sm:$0xff]  ;;  %v850_v21 = vld [vmem:[%s1866_s30 + $0x38] sm:$0xff]  ;;  %v932_v30 = vand.u32 127, %v931_v29 }
 0x3e4   : > { %v849_v22 = vld [vmem:[%s1866_s30 + $0x30] sm:$0xff]  ;;  %v848_v23 = vld [vmem:[%s1866_s30 + $0x28] sm:$0xff]  ;;  %v847_v24 = vld [vmem:[%s1866_s30 + $0x20] sm:$0xff] }
 0x3e5   : > { %v846_v25 = vld [vmem:[%s1866_s30 + $0x18] sm:$0xff]  ;;  %v845_v26 = vld [vmem:[%s1866_s30 + $0x10] sm:$0xff]  ;;  %v844_v27 = vld [vmem:[%s1866_s30 + $0x8] sm:$0xff]  ;;  %v934_v32 = vadd.s32 %v933_v31, %v932_v30 }
 0x3e6   : > { %1316 = vmatpush.xpose.msk.msra.mxu0 %vm859_vm9, %v857_v14  ;;  %v843_v28 = vld [vmem:[%s1866_s30] sm:$0xff]  ;;  %v942_v36 = vld [vmem:[#allocation5] sm:$0xff] }
 0x3e7   : > { %vm935_vm10 = vcmp.lt.s32.totalorder %v934_v32, 32  ;;  %v944_v45 = vld [vmem:[#allocation6] sm:$0xff] }
 0x3ea   : > { %1317 = vmatpush.xpose.msk.msra.mxu0 %vm859_vm9, %v856_v15 }
 0x3ee   : > { %1318 = vmatpush.xpose.msk.msra.mxu0 %vm859_vm9, %v855_v16 }
 0x3f2   : > { %1319 = vmatpush.xpose.msk.msra.mxu0 %vm859_vm9, %v854_v17 }
 0x3f6   : > { %1320 = vmatpush.xpose.msk.msra.mxu0 %vm859_vm9, %v853_v18 }
 0x3fa   : > { %1321 = vmatpush.xpose.msk.msra.mxu0 %vm859_vm9, %v852_v19 }
 0x3fe   : > { %1322 = vmatpush.xpose.msk.msra.mxu0 %vm859_vm9, %v851_v20 }
 0x402   : > { %1323 = vmatpush.xpose.msk.msra.mxu0 %vm859_vm9, %v850_v21 }
 0x406   : > { %1324 = vmatpush.xpose.msk.msra.mxu0 %vm859_vm9, %v849_v22 }
 0x40a   : > { %1325 = vmatpush.xpose.msk.msra.mxu0 %vm859_vm9, %v848_v23 }
 0x40e   : > { %1326 = vmatpush.xpose.msk.msra.mxu0 %vm859_vm9, %v847_v24 }
 0x412   : > { %1327 = vmatpush.xpose.msk.msra.mxu0 %vm859_vm9, %v846_v25 }
 0x416   : > { %1328 = vmatpush.xpose.msk.msra.mxu0 %vm859_vm9, %v845_v26 }
 0x41a   : > { %1329 = vmatpush.xpose.msk.msra.mxu0 %vm859_vm9, %v844_v27 }
 0x41e   : > { %1330 = vmatpush.xpose.msk.msra.mxu0 %vm859_vm9, %v843_v28 }
 0x421   : > { %1331 = vmatmul.msk.f32.vlgmr.msra.gmra.mxu0 %vm859_vm9, %v1761_v1 }
 0x49e   : > { %v928_v33 = vpop.f32.mrf.mxu0 }
 0x49f   : > { %v936_v34 = vsel %vm935_vm10, %v928_v33, -1e+30 }
 0x4a0   : > { %939 = vst [vmem:[%s938_s22] sm:$0xff] %v936_v34  ;;  %940 = vmax.xlane.f32.xlu0 %v936_v34 }
 0x513   : > { %v941_v37 = vpop.xlane.xlu0 %940 }
 0x514   : > { %v943_v38 = vmax.f32 %v942_v36, %v941_v37 }
 0x516   : > { %v945_v39 = vsub.f32 %v942_v36, %v943_v38  ;;  %962 = vst.msk [vmem:[#allocation5] sm:$0xff] %vm960_vm11, %v943_v38  ;;  %951 = vperm.xlu0 %1468, %v943_v38  }
 0x518   : > { %v946_v43 = vmul.f32 1.442695, %v945_v39 }
 0x588   : > { %v952_v1 = vpop.permute.xlu0 %951 }
 0x589   : > { %v954_v40 = vsub.f32 %v936_v34, %v952_v1 }
 0x58b   : > { %v955_v41 = vmul.f32 1.442695, %v954_v40 }
 0x58d   : > { %1469 = vpow2.f32 %v955_v41 }
 0x58e   : > { %1471 = vpow2.f32 %v946_v43 }
 0x593   : > { %v1470_v42 = vpop.eup %1469 }
 0x594   : > { %957 = vadd.xlane.f32.xlu1 %v1470_v42  ;;  %v1472_v44 = vpop.eup %1471 }
 0x595   : > { %v948_v46 = vmul.f32 %v1472_v44, %v944_v45 }
 0x606   : > { %965 = sbr.rel (%p1304_p13) target bundleno = 1566 (0x61e), region = 88 }
 0x607   : > { %v958_v47 = vpop.xlane.xlu1 %957 }
 0x608   : > { %v959_v48 = vadd.f32 %v958_v47, %v948_v46 }
 0x60a   : > { %961 = vst.msk [vmem:[#allocation6] sm:$0xff] %vm960_vm11, %v959_v48 }
 0x60b   : > { %v966_v51 = vld [vmem:[#allocation5] sm:$0xff] }
 0x611   : > { %v967_v49 = vld [vmem:[#allocation6] sm:$0xff] }
 0x612   : > { %1473 = vlog2.f32 %v967_v49 }
 0x618   : > { %v1474_v50 = vpop.eup %1473 }
 0x619   : > { %v969_v52 = vmul.f32 0.6931472, %v1474_v50 }
 0x61b   : > { %v970_v53 = vadd.f32 %v969_v52, %v966_v51 }
 0x61d   : > { %971 = vst.msk [vmem:[#allocation7] sm:$0xff] %vm960_vm11, %v970_v53 }
 0x61e PF: > { %p1334_p1 = scmp.lt.s32.totalorder %s1558_s18, 1 }
 0x61f   : > { %s1335_s15 = sadd.s32 (!%p1334_p1), 4294967295, %s1558_s18  ;;  %s2085_s13 = scalar_lea.vmem (!%p1334_p1), [#allocation9], %s1733_s25 }
 0x620   : > { %975 = sbr.rel (%p1334_p1) target bundleno = 1784 (0x6f8), region = 92  ;;  %s1337_s19 = sshll.u32 (!%p1334_p1), %s1335_s15, 7 }
 0x625   : > { %v996_v54 = vld [vmem:[%s574_s21] sm:$0x1]  ;;  %v997_v55 = vlaneseq  ;;  %v1015_v57 = vstv %s1337_s19  ;;  %vm1067_vm12 = vcmask 64512   ;;  %v1580_v63 = vmov 0.0   ;;  %v980_v8 = vld [vmem:[#allocation7] sm:$0xff]  ;;  %v987_v14 = vld [vmem:[#allocation4] sm:$0xff] }
 0x626   : > { %v1016_v58 = vsub.s32 %v996_v54, %v1015_v57  ;;  %v1581_v10 = vmov 0   ;;  %v1066_v32 = vld [vmem:[#allocation3] sm:$0xff]  ;;  %s1336_s21 = sshll.u32 %s1335_s15, 3 }
 0x627   : > { %v1919_v56 = vshrl.u32 %v997_v55, 7  ;;  %1475 = vset.pattern.permute.xlu0 %v1581_v10  ;;  %s978_s23 = scalar_lea.vmem [#allocation2], %s1336_s21 }
 0x628   : > { %v1923_v61 = vperm.slane %v1016_v58, 0  ;;  %983 = vperm.xlu0 %1475, %v980_v8   ;;  %v979_v34 = vld [vmem:[%s978_s23] sm:$0xff] }
 0x629   : > { %v1013_v59 = vadd.s32 120, %v1919_v56  ;;  %v1012_v60 = vadd.s32 112, %v1919_v56  ;;  %v1011_v62 = vadd.s32 104, %v1919_v56  ;;  %v1010_v3 = vadd.s32 96, %v1919_v56 }
 0x62a   : > { %v1009_v5 = vadd.s32 88, %v1919_v56  ;;  %v1008_v7 = vadd.s32 80, %v1919_v56  ;;  %v1007_v11 = vadd.s32 72, %v1919_v56  ;;  %v1006_v13 = vadd.s32 64, %v1919_v56 }
 0x62b   : > { %vm1033_vm13 = vcmp.eq.s32.totalorder %v1013_v59, %v1923_v61  ;;  %vm1032_vm14 = vcmp.eq.s32.totalorder %v1012_v60, %v1923_v61  ;;  %vm1031_vm15 = vcmp.eq.s32.totalorder %v1011_v62, %v1923_v61  ;;  %vm1030_vm0 = vcmp.eq.s32.totalorder %v1010_v3, %v1923_v61 }
 0x62c   : > { %v1353_v0 = vsel %vm1033_vm13, 1.0, %v1580_v63  ;;  %v1352_v2 = vsel %vm1032_vm14, 1.0, %v1580_v63  ;;  %v1351_v4 = vsel %vm1031_vm15, 1.0, %v1580_v63  ;;  %v1350_v6 = vsel %vm1030_vm0, 1.0, %v1580_v63 }
 0x62d   : > { %1354 = vmatpush.xpose.msk.msra.mxu0 %vm1067_vm12, %v1353_v0  ;;  %vm1029_vm1 = vcmp.eq.s32.totalorder %v1009_v5, %v1923_v61  ;;  %vm1028_vm2 = vcmp.eq.s32.totalorder %v1008_v7, %v1923_v61  ;;  %vm1027_vm3 = vcmp.eq.s32.totalorder %v1007_v11, %v1923_v61  ;;  %vm1026_vm4 = vcmp.eq.s32.totalorder %v1006_v13, %v1923_v61 }
 0x62e   : > { %v1349_v9 = vsel %vm1029_vm1, 1.0, %v1580_v63  ;;  %v1348_v12 = vsel %vm1028_vm2, 1.0, %v1580_v63  ;;  %v1347_v15 = vsel %vm1027_vm3, 1.0, %v1580_v63  ;;  %v1005_v16 = vadd.s32 56, %v1919_v56 }
 0x62f   : > { %v1346_v17 = vsel %vm1026_vm4, 1.0, %v1580_v63  ;;  %v1004_v18 = vadd.s32 48, %v1919_v56  ;;  %v1003_v20 = vadd.s32 40, %v1919_v56  ;;  %v1002_v22 = vadd.s32 32, %v1919_v56 }
 0x630   : > { %990 = vperm.xlu0 %1475, %v987_v14   ;;  %vm1025_vm5 = vcmp.eq.s32.totalorder %v1005_v16, %v1923_v61  ;;  %v1001_v24 = vadd.s32 24, %v1919_v56  ;;  %v1000_v26 = vadd.s32 16, %v1919_v56  ;;  %v999_v28 = vadd.s32 8, %v1919_v56 }
 0x631   : > { %1355 = vmatpush.xpose.msk.msra.mxu0 %vm1067_vm12, %v1352_v2  ;;  %v1345_v19 = vsel %vm1025_vm5, 1.0, %v1580_v63  ;;  %vm1024_vm6 = vcmp.eq.s32.totalorder %v1004_v18, %v1923_v61  ;;  %vm1023_vm7 = vcmp.eq.s32.totalorder %v1003_v20, %v1923_v61  ;;  %vm1022_vm8 = vcmp.eq.s32.totalorder %v1002_v22, %v1923_v61 }
 0x632   : > { %v1344_v21 = vsel %vm1024_vm6, 1.0, %v1580_v63  ;;  %v1343_v23 = vsel %vm1023_vm7, 1.0, %v1580_v63  ;;  %v1342_v25 = vsel %vm1022_vm8, 1.0, %v1580_v63  ;;  %vm1021_vm9 = vcmp.eq.s32.totalorder %v1001_v24, %v1923_v61 }
 0x633   : > { %v1341_v27 = vsel %vm1021_vm9, 1.0, %v1580_v63  ;;  %vm1020_vm10 = vcmp.eq.s32.totalorder %v1000_v26, %v1923_v61  ;;  %vm1019_vm11 = vcmp.eq.s32.totalorder %v999_v28, %v1923_v61  ;;  %vm1018_vm13 = vcmp.eq.s32.totalorder %v1919_v56, %v1923_v61 }
 0x634   : > { %v1340_v29 = vsel %vm1020_vm10, 1.0, %v1580_v63  ;;  %v1339_v30 = vsel %vm1019_vm11, 1.0, %v1580_v63  ;;  %v1338_v31 = vsel %vm1018_vm13, 1.0, %v1580_v63 }
 0x635   : > { %1356 = vmatpush.xpose.msk.msra.mxu0 %vm1067_vm12, %v1351_v4 }
 0x639   : > { %1357 = vmatpush.xpose.msk.msra.mxu0 %vm1067_vm12, %v1350_v6 }
 0x63d   : > { %1358 = vmatpush.xpose.msk.msra.mxu0 %vm1067_vm12, %v1349_v9 }
 0x641   : > { %1359 = vmatpush.xpose.msk.msra.mxu0 %vm1067_vm12, %v1348_v12 }
 0x645   : > { %1360 = vmatpush.xpose.msk.msra.mxu0 %vm1067_vm12, %v1347_v15 }
 0x649   : > { %1361 = vmatpush.xpose.msk.msra.mxu0 %vm1067_vm12, %v1346_v17 }
 0x64d   : > { %1362 = vmatpush.xpose.msk.msra.mxu0 %vm1067_vm12, %v1345_v19 }
 0x651   : > { %1363 = vmatpush.xpose.msk.msra.mxu0 %vm1067_vm12, %v1344_v21 }
 0x655   : > { %1364 = vmatpush.xpose.msk.msra.mxu0 %vm1067_vm12, %v1343_v23 }
 0x659   : > { %1365 = vmatpush.xpose.msk.msra.mxu0 %vm1067_vm12, %v1342_v25 }
 0x65d   : > { %1366 = vmatpush.xpose.msk.msra.mxu0 %vm1067_vm12, %v1341_v27 }
 0x661   : > { %1367 = vmatpush.xpose.msk.msra.mxu0 %vm1067_vm12, %v1340_v29 }
 0x665   : > { %1368 = vmatpush.xpose.msk.msra.mxu0 %vm1067_vm12, %v1339_v30 }
 0x669   : > { %1369 = vmatpush.xpose.msk.msra.mxu0 %vm1067_vm12, %v1338_v31 }
 0x66c   : > { %1370 = vmatmul.msk.f32.vlgmr.msra.gmra.mxu0 %vm1067_vm12, %v1066_v32 }
 0x69a   : > { %v984_v33 = vpop.permute.xlu0 %983 }
 0x69b   : > { %v986_v35 = vsub.f32 %v979_v34, %v984_v33 }
 0x6a2   : > { %v991_v36 = vpop.permute.xlu0 %990 }
 0x6a3   : > { %v993_v37 = vadd.f32 %v991_v36, %v986_v35 }
 0x6a5   : > { %v994_v38 = vmul.f32 1.442695, %v993_v37 }
 0x6a7   : > { %1476 = vpow2.f32 %v994_v38 }
 0x6ad   : > { %v1477_v39 = vpop.eup %1476 }
 0x6e9   : > { %v1136_v1 = vpop.f32.mrf.mxu0 }
 0x6ea   : > { %v1137_v40 = vadd.f32 %v1477_v39, %v1136_v1 }
 0x6ec   : > { %v1139_v41 = vadd.f32 1e-30, %v1137_v40 }
 0x6ee   : > { %1478 = vlog2.f32 %v1139_v41 }
 0x6f4   : > { %v1479_v42 = vpop.eup %1478 }
 0x6f5   : > { %v1141_v43 = vmul.f32 0.6931472, %v1479_v42 }
 0x6f7   : > { %1142 = vst [vmem:[%s2085_s13] sm:$0xff] %v1141_v43 }
 0x6f8 PF: > { %s2086_s20 = sld [smem:[#allocation15_spill]]  ;;  %s1372_s28 = sadd.s32 4294967295, %s1558_s18 }
 0x6f9   : > { %s2087_s24 = sld [smem:[#allocation13_spill]]  ;;  %p1152_p2 = scmp.gt.s32.totalorder %s1372_s28, 0 }
 0x6fa   : > { %s2089_s26 = scalar_lea.vmem [#allocation9], %s1733_s25  ;;  %s2090_s27 = sld [smem:[#allocation25_spill]] }
 0x6fb   : > { %s2109_s28 = smov (!%p1152_p2, %s1372_s28), 0  ;;  %s1161_s17 = sshll.u32 %s2089_s26, 4  ;;  %s1162_s17 = int_to_ptr.vmem [resolvable:$true] %s1161_s17 }
 0x6fe   : > { %s1157_s30 = sadd.s32 %s2086_s20, %s2109_s28 }
 0x6ff   : > { %s1373_s14 = sshll.u32 %s1157_s30, 3  ;;  %s2091_s21 = sand.u32 1, %s2087_s24  }
 0x700   : > { %s1159_s16 = scalar_lea.hbm %s2090_s27, %s1373_s14  ;;  %s1144_s23 = scalar_lea.sflag [#allocation10], %s2091_s21 }
 0x701   : > { %s1163_s19 = sshll.u32 %s1159_s16, 4  ;;  %s1500_s20 = scalar_lea.hbm %s2090_s27, 16  ;;  %s1164_s19 = int_to_ptr.hbm [resolvable:$true] %s1163_s19 }
 0x702   : > { %s1494_s13 = sshra.s32 %s1164_s19, 4  ;;  %s1495_s13 = int_to_ptr.hbm [resolvable:$true] %s1494_s13 }
 0x703   : > { %s1496_s0 = scalar_lea.hbm %s1495_s13, 8  ;;  %p1501_p7 = scmp.lt.s32.totalorder %s1495_s13, %s2090_s27 }
 0x704   : > { %p1497_p3 = scmp.ne.s32.totalorder %s1495_s13, %s1496_s0  ;;  %p1502_p8 = scmp.lt.s32.totalorder %s1500_s20, %s1496_s0 }
 0x706   : > { %p1498_p4 = pnand %p1497_p3, %p1716_p5  ;;  %p1503_p9 = por %p1502_p8, %p1501_p7 }
 0x708   : > { %p1499_p6 = pneg %p1498_p4 }
 0x70a   : > { %p1504_p11 = pnand %p1503_p9, %p1499_p6 }
 0x70c   : > { %1507 = shalt.err (!%p1504_p11)
}
 0x70d   : > { %1376 = dma.vmem_to_hbm [thread:$0]  (%p1716_p5), %s1162_s17, 128, %s1164_s19, %s1144_s23  }
 0x70e PF: > { %s2092_s24 = sld [smem:[#allocation18_spill]] }
 0x70f   : > { %s2093_s30 = sld [smem:[#allocation12_spill]] }
 0x714   : > { %p1382_p12 = scmp.ge.s32.totalorder %s2092_s24, 2 }
 0x715   : > { %s1175_s22 = sand.u32 1, %s2093_s30  }
 0x716   : > { %p1379_p13 = pnand %p1382_p12, %p1725_p10  ;;  %s1176_s15 = scalar_lea.sflag [#allocation10], %s1175_s22 }
 0x718   : > { %p1380_p0 = pneg %p1379_p13 }
 0x71a   : > { %1541 = dma.done.wait (%p1380_p0), %s1176_s15, 128  }
 0x71b   : > { %1543 = vsyncadd (%p1380_p0), %s1176_s15, 4294967168  ;;  %s29_s22 = sadd.s32 1, %s2092_s24   ;;  %s2095_s15 = sld [smem:[#allocation13_spill]] }
 0x71c   : > { %p26_p1 = scmp.ge.s32.totalorder %s29_s22, 6   ;;  %s2096_s16 = sld [smem:[#allocation14_spill]] }
 0x71d   : > { %s2097_s17 = sld [smem:[#allocation22_spill]] }
 0x71e   : > { %s2098_s18 = sld [smem:[#allocation16_spill]]  ;;  %28 = sbr.rel (!%p26_p1) target bundleno = 8 (0x8), region = 142 }
 0x71f   : > { %s2099_s19 = sld [smem:[#allocation17_spill]] }
 0x720   : > { %s2100_s20 = sld [smem:[#allocation19_spill]] }
 0x721   : > { %s2101_s21 = sld [smem:[#allocation20_spill]] }
 0x723   :  { %1182 = vsyncpa [#allocation10], 1 }
 0x724   :  { %1184 = vsyncpa [#allocation10 + $0x1], 1 }

</bundles_post_ra>
